<compile_context>
chip_gen: v6e
topology: v6e:2x2x1
jax: 0.10.0
libtpu: 0.0.40
codegen_flags: <defaults>
</compile_context>

<pallas_src>
import functools

import jax
import jax.numpy as jnp
from jax.experimental import pallas as pl
from jax.experimental.pallas import tpu as pltpu


def _round_up(x, m):
    return ((x + m - 1) // m) * m


# ----------------------------------------------------------------------------
# Pallas kernel: one (tm, Coutp) tile of  leaky_relu(patches @ W + b)
# ----------------------------------------------------------------------------
def _conv_mm_kernel(p_ref, w_ref, b_ref, o_ref, *, negative_slope):
    acc = jnp.dot(p_ref[...], w_ref[...], preferred_element_type=jnp.float32)
    acc = acc + b_ref[...]
    if negative_slope is not None:
        acc = jnp.where(acc > 0, acc, negative_slope * acc)
    o_ref[...] = acc.astype(o_ref.dtype)


# ----------------------------------------------------------------------------
# Tile selection: big row tiles, >=2 blocks when possible, VMEM-budget capped
# ----------------------------------------------------------------------------
def _choose_tm(M, Kp, Coutp):
    if M <= 256:
        tm = _round_up(max(M, 16), 16)              # single block, minimal padding
    else:
        # at least 2 row blocks (v7x megacore), cap at 512 rows
        tm = min(512, _round_up((M + 1) // 2, 16))

    def budget(t):
        # bf16 double-buffered panels + f32 dot result (compiler temp)
        return 2 * (t * Kp + Kp * Coutp + t * Coutp) * 2 + t * Coutp * 4

    while tm > 16 and budget(tm) > 40 * 1024 * 1024:
        tm = _round_up(tm // 2, 16)
    return tm


# ----------------------------------------------------------------------------
# Conv2d (+ LeakyReLU) wrapper
# ----------------------------------------------------------------------------
def conv2d_leaky(x, layer, *, pad=2):
    """x: (N,H,W,Cin) NHWC (f32 or bf16).  layer: dict from prepare_conv_layer."""
    N, H, W, Cin = x.shape
    KH, KW = layer["kh"], layer["kw"]
    Cout, stride = layer["cout"], layer["stride"]
    negative_slope = 0.2 if layer["leaky"] else None
    out_dtype = jnp.bfloat16 if layer["leaky"] else jnp.float32
    wmat, bmat = layer["wmat"], layer["bmat"]       # (Kp, Coutp) bf16, (1, Coutp) f32
    Kp, Coutp = wmat.shape
    K = KH * KW * Cin

    # bf16 BEFORE padding/slicing so the im2col intermediate is half width.
    xp = jnp.pad(x.astype(jnp.bfloat16),
                 ((0, 0), (pad, pad), (pad, pad), (0, 0)))
    Hp, Wp = H + 2 * pad, W + 2 * pad
    Hout = (Hp - KH) // stride + 1
    Wout = (Wp - KW) // stride + 1
    M = N * Hout * Wout

    # TODO(synk): replace the XLA-side im2col with an implicit GEMM (generate
    # the (kh,kw) taps from the padded NHWC activation inside the kernel) to
    # cut activation HBM traffic by KH*KW/stride^2.
    cols = [xp[:, i:i + stride * Hout:stride, j:j + stride * Wout:stride, :]
            for i in range(KH) for j in range(KW)]
    patches = jnp.stack(cols, axis=3).reshape(M, K)

    tm = _choose_tm(M, Kp, Coutp)
    Mp = _round_up(M, tm)
    patches = jnp.pad(patches, ((0, Mp - M), (0, Kp - K)))

    out = pl.pallas_call(
        functools.partial(_conv_mm_kernel, negative_slope=negative_slope),
        out_shape=jax.ShapeDtypeStruct((Mp, Coutp), out_dtype),
        grid_spec=pltpu.PrefetchScalarGridSpec(
            num_scalar_prefetch=0,
            grid=(Mp // tm,),
            in_specs=[
                pl.BlockSpec((tm, Kp), lambda i: (i, 0)),      # patches (K-resident)
                pl.BlockSpec((Kp, Coutp), lambda i: (0, 0)),   # weight  (VMEM-resident)
                pl.BlockSpec((1, Coutp), lambda i: (0, 0)),    # bias
            ],
            out_specs=pl.BlockSpec((tm, Coutp), lambda i: (i, 0)),
        ),
        compiler_params=pltpu.CompilerParams(
            dimension_semantics=("parallel",),
            vmem_limit_bytes=48 * 1024 * 1024),
    )(patches, wmat, bmat)

    return out[:M, :Cout].reshape(N, Hout, Wout, Cout)


# ----------------------------------------------------------------------------
# AvgPool2d(3, stride=2, padding=1, count_include_pad=False)
# ----------------------------------------------------------------------------
def avgpool3x3_s2(x):
    """x: (N,H,W,C) NHWC f32.
    Kept in XLA per the perf review: at C=3..4 a Pallas kernel is lane-sparse
    (masked stores) and the shifted-tap stack adds 9x HBM traffic."""
    # TODO(synk): lane-dense Pallas variant (W*C on the lane axis) if this op
    # ever shows up in profiles; it is negligible next to the conv stacks.
    pad = ((0, 0), (1, 1), (1, 1), (0, 0))
    sums = jax.lax.reduce_window(x, 0.0, jax.lax.add,
                                 (1, 3, 3, 1), (1, 2, 2, 1), pad)
    ones = jnp.ones((x.shape[0], x.shape[1], x.shape[2], 1), x.dtype)
    cnts = jax.lax.reduce_window(ones, 0.0, jax.lax.add,
                                 (1, 3, 3, 1), (1, 2, 2, 1), pad)
    return sums / cnts


# ----------------------------------------------------------------------------
# Parameter setup (deterministic, synthetic weights)
# ----------------------------------------------------------------------------
def spectral_norm_weight(w, n_iters=30):
    """Spectral normalization (W / sigma_max) applied once at setup time."""
    cout = w.shape[0]
    wmat = w.reshape(cout, -1)
    u = jnp.ones((cout,), jnp.float32) / jnp.sqrt(jnp.float32(cout))
    v = None
    for _ in range(n_iters):
        v = wmat.T @ u
        v = v / (jnp.linalg.norm(v) + 1e-12)
        u = wmat @ v
        u = u / (jnp.linalg.norm(u) + 1e-12)
    sigma = u @ (wmat @ v)
    return w / sigma


def prepare_conv_layer(w, b, stride, leaky):
    """Hoisted weight preprocessing: transpose/pad/bf16-cast once, not per call."""
    Cout, Cin, KH, KW = w.shape
    K = KH * KW * Cin
    Kp = _round_up(K, 128)
    Coutp = _round_up(Cout, 128)
    wmat = jnp.transpose(w, (2, 3, 1, 0)).reshape(K, Cout)     # (kh,kw,cin) x cout
    wmat = jnp.pad(wmat, ((0, Kp - K), (0, Coutp - Cout))).astype(jnp.bfloat16)
    bmat = jnp.pad(b.reshape(1, Cout).astype(jnp.float32),
                   ((0, 0), (0, Coutp - Cout)))
    return dict(wmat=wmat, bmat=bmat, kh=KH, kw=KW, cout=Cout,
                stride=stride, leaky=leaky)


def nlayer_layer_specs(input_nc, ndf, n_layers):
    """List of (cin, cout, stride, use_spectral_norm, leaky)."""
    specs = [(input_nc, ndf, 2, False, True)]
    nf = ndf
    for _ in range(1, n_layers):
        nf_prev, nf = nf, min(nf * 2, 512)
        specs.append((nf_prev, nf, 2, True, True))
    nf_prev, nf = nf, min(nf * 2, 512)
    specs.append((nf_prev, nf, 1, True, True))
    specs.append((nf, 1, 1, False, False))
    return specs


def init_multiscale_params(key, input_nc, ndf, n_layers, num_D):
    specs = nlayer_layer_specs(input_nc, ndf, n_layers)
    all_params = []
    for _ in range(num_D):
        layers = []
        for (cin, cout, stride, sn, leaky) in specs:
            key, k1, k2 = jax.random.split(key, 3)
            w = jax.random.normal(k1, (cout, cin, 4, 4), jnp.float32) * 0.02
            b = jax.random.normal(k2, (cout,), jnp.float32) * 0.01
            if sn:
                w = spectral_norm_weight(w)
            layers.append(prepare_conv_layer(w, b, stride, leaky))
        all_params.append(layers)
    return all_params


# ----------------------------------------------------------------------------
# Forward passes
# ----------------------------------------------------------------------------
def nlayer_forward(layers, x_nhwc):
    """NLayerDiscriminator.forward on NHWC input."""
    x = x_nhwc
    for layer in layers:
        x = conv2d_leaky(x, layer, pad=2)
    return x


def multiscale_forward(all_params, x_nchw, num_D=3):
    """MultiscaleDiscriminator.forward.  Input/outputs NCHW like PyTorch.

    Returns a list (len num_D) of single-element lists, matching the reference
    `result.append(self.singleD_forward(model, input_downsampled))`.
    """
    x = jnp.transpose(x_nchw, (0, 2, 3, 1)).astype(jnp.float32)   # NCHW -> NHWC
    result = []
    x_down = x
    for i in range(num_D):
        layers = all_params[num_D - 1 - i]
        out_nhwc = nlayer_forward(layers, x_down)
        result.append([jnp.transpose(out_nhwc, (0, 3, 1, 2))])    # back to NCHW
        if i != num_D - 1:
            x_down = avgpool3x3_s2(x_down)
    return result


# ----------------------------------------------------------------------------
if __name__ == "__main__":
    key = jax.random.PRNGKey(0)
    k_x, k_p = jax.random.split(key)

    # Small, module-consistent shapes: batch=2, input_nc=4, 16x16 spatial, ndf=8.
    N, input_nc, H, W = 2, 4, 16, 16
    ndf, n_layers, num_D = 8, 3, 3

    x = jax.random.normal(k_x, (N, input_nc, H, W), jnp.float32)
    params = init_multiscale_params(k_p, input_nc, ndf, n_layers, num_D)

    result = multiscale_forward(params, x, num_D=num_D)

    for scale_out in result:
        jax.block_until_ready(scale_out[0])

    # Sanity: expected output spatial sizes for a 16x16 input.
    assert result[0][0].shape == (N, 1, 5, 5)
    assert result[1][0].shape == (N, 1, 4, 4)
    assert result[2][0].shape == (N, 1, 4, 4)

    print("KERNEL_OK")
</pallas_src>

<mosaic_0001>
module attributes {stable_mosaic.version = 11 : i64} {
  func.func @_conv_mm_kernel(%arg0: i32, %arg1: memref<176x128xbf16, #tpu.memory_space<vmem>>, %arg2: memref<128x128xbf16, #tpu.memory_space<vmem>>, %arg3: memref<1x128xf32, #tpu.memory_space<vmem>>, %arg4: memref<176x128xbf16, #tpu.memory_space<vmem>>) attributes {dimension_semantics = [#tpu.dimension_semantics<parallel>], iteration_bounds = array<i64: 1>, scalar_prefetch = 0 : i64, scratch_operands = 0 : i64, tpu.core_type = #tpu.core_type<tc>, window_params = [{transform_indices = @transform_0, window_bounds = array<i64: 176, 128>}, {pipeline_mode = #tpu.pipeline_mode<synchronous>, transform_indices = @transform_1, window_bounds = array<i64: 128, 128>}, {pipeline_mode = #tpu.pipeline_mode<synchronous>, transform_indices = @transform_2, window_bounds = array<i64: 1, 128>}, {transform_indices = @transform_3, window_bounds = array<i64: 176, 128>}]} {
    %c0 = arith.constant 0 : index
    %c0_0 = arith.constant 0 : index
    %0 = vector.load %arg1[%c0, %c0_0] : memref<176x128xbf16, #tpu.memory_space<vmem>>, vector<176x128xbf16>
    %c0_1 = arith.constant 0 : index
    %c0_2 = arith.constant 0 : index
    %1 = vector.load %arg2[%c0_1, %c0_2] : memref<128x128xbf16, #tpu.memory_space<vmem>>, vector<128x128xbf16>
    %cst = arith.constant dense<0.000000e+00> : vector<176x128xf32>
    %2 = tpu.matmul %0, %1, %cst {dimension_numbers = #tpu.dot_dimension_numbers<[1], [0], [0], [1], [0, 0, 1, 1], [], []>} : vector<176x128xbf16>, vector<128x128xbf16>, vector<176x128xf32> -> vector<176x128xf32>
    %c0_3 = arith.constant 0 : index
    %c0_4 = arith.constant 0 : index
    %3 = vector.load %arg3[%c0_3, %c0_4] : memref<1x128xf32, #tpu.memory_space<vmem>>, vector<1x128xf32>
    %4 = vector.broadcast %3 : vector<1x128xf32> to vector<176x128xf32>
    %5 = arith.addf %2, %4 : vector<176x128xf32>
    %cst_5 = arith.constant 0.000000e+00 : f32
    %6 = vector.broadcast %cst_5 : f32 to vector<176x128xf32>
    %7 = arith.cmpf ogt, %5, %6 : vector<176x128xf32>
    %cst_6 = arith.constant 2.000000e-01 : f32
    %8 = vector.broadcast %cst_6 : f32 to vector<176x128xf32>
    %9 = arith.mulf %8, %5 : vector<176x128xf32>
    %10 = arith.select %7, %5, %9 : vector<176x128xi1>, vector<176x128xf32>
    %11 = arith.truncf %10 : vector<176x128xf32> to vector<176x128xbf16>
    %c0_7 = arith.constant 0 : index
    %c0_8 = arith.constant 0 : index
    %12 = vector.load %arg4[%c0_7, %c0_8] : memref<176x128xbf16, #tpu.memory_space<vmem>>, vector<176x128xbf16>
    tpu.vector_store %arg4[%c0_7, %c0_8], %11 {strides = array<i32>} : memref<176x128xbf16, #tpu.memory_space<vmem>>, vector<176x128xbf16>,
    return
  }
  func.func @transform_0(%arg0: i32) -> (i32, i32) {
    %c0_i32 = arith.constant 0 : i32
    %c0_i32_0 = arith.constant 0 : i32
    return %arg0, %c0_i32 : i32, i32
  }
  func.func @transform_1(%arg0: i32) -> (i32, i32) {
    %c0_i32 = arith.constant 0 : i32
    %c0_i32_0 = arith.constant 0 : i32
    %c0_i32_1 = arith.constant 0 : i32
    return %c0_i32, %c0_i32_0 : i32, i32
  }
  func.func @transform_2(%arg0: i32) -> (i32, i32) {
    %c0_i32 = arith.constant 0 : i32
    %c0_i32_0 = arith.constant 0 : i32
    %c0_i32_1 = arith.constant 0 : i32
    return %c0_i32, %c0_i32_0 : i32, i32
  }
  func.func @transform_3(%arg0: i32) -> (i32, i32) {
    %c0_i32 = arith.constant 0 : i32
    %c0_i32_0 = arith.constant 0 : i32
    return %arg0, %c0_i32 : i32, i32
  }
}

</mosaic_0001>

<bundles_post_ra>
// kernel: tpu_custom_call.1
= control target key start
LH: loop header
LB: loop body
LE: loop exit
PB: predicated region body
PF: predicated region fallthrough
CT: control target
= control target key end

     0   :  { %8 = vsyncpa [#allocation3], 0  ;;  %s944_s0 = inlined_call_operand.hbm [shape: bf16[176,128], index: 0, kind: input, shape index: {}]   ;;  %s945_s1 = inlined_call_operand.hbm [shape: bf16[128,128], index: 1, kind: input, shape index: {}]   ;;  %s946_s2 = inlined_call_operand.vmem [shape: f32[1,128], index: 2, kind: input, shape index: {}]   ;;  %s947_s3 = inlined_call_operand.hbm [shape: bf16[176,128], index: 3, kind: output, shape index: {}]  }
   0x1   :  { %9 = vsyncpa [#allocation6], 0 }
   0x2   :  { %10 = vsyncpa [#allocation4], 0  ;;  %s834_s12 = smov [#allocation2]  }
   0x3   :  { %s16_s13 = sshll.u32 %s834_s12, 4  ;;  %s17_s13 = int_to_ptr.vmem [resolvable:$true] %s16_s13 }
   0x4   :  { %s776_s14 = scalar_lea.vmem %s17_s13, 1408  ;;  %p781_p1 = scmp.lt.s32.totalorder %s17_s13, %s17_s13 }
   0x5   :  { %p777_p0 = scmp.ne.s32.totalorder %s17_s13, %s776_s14  ;;  %p782_p2 = scmp.lt.s32.totalorder %s776_s14, %s776_s14 }
   0x7   :  { %p783_p3 = por %p782_p2, %p781_p1 }
   0x9   :  { %p784_p4 = pnand %p783_p3, %p777_p0 }
   0xb   :  { %787 = shalt.err (!%p784_p4)
}
   0xc   :  { %s835_s15 = smov 64   ;;  %s836_s16 = smov 4  }
   0xd   :  { %22 = dma.hbm_to_vmem [thread:$0]  %s944_s0, 1408, %s17_s13, [#allocation3], %s835_s15, %s835_s15, %s836_s16  }
   0xe   :  { %s837_s19 = smov [#allocation5]  }
   0xf   :  { %s28_s20 = sshll.u32 %s837_s19, 4  ;;  %s29_s20 = int_to_ptr.vmem [resolvable:$true] %s28_s20 }
  0x10   :  { %s796_s21 = scalar_lea.vmem %s29_s20, 1024  ;;  %p801_p6 = scmp.lt.s32.totalorder %s29_s20, %s29_s20 }
  0x11   :  { %p797_p5 = scmp.ne.s32.totalorder %s29_s20, %s796_s21  ;;  %p802_p7 = scmp.lt.s32.totalorder %s796_s21, %s796_s21 }
  0x13   :  { %p803_p8 = por %p802_p7, %p801_p6 }
  0x15   :  { %p804_p9 = pnand %p803_p8, %p797_p5 }
  0x17   :  { %807 = shalt.err (!%p804_p9)
}
  0x18   :  { %34 = dma.hbm_to_vmem [thread:$0]  %s945_s1, 1024, %s29_s20, [#allocation6], %s835_s15, %s835_s15, %s836_s16  }
  0x19   :  { %828 = dma.done.wait [#allocation3], 1408  }
  0x1a   :  { %829 = vsyncadd [#allocation3], 4294965888 }
  0x1b   :  { %830 = dma.done.wait [#allocation6], 1024  }
  0x1c   :  { %831 = vsyncadd [#allocation6], 4294966272  ;;  %v838_v0 = vmov 0.0   ;;  %vm839_vm0 = vmmov 0   ;;  %v749_v1 = vld [vmem:[#allocation5 + $0x38] sm:$0xff]   ;;  %v750_v2 = vld [vmem:[#allocation5 + $0x30] sm:$0xff]  }
  0x1d   :  { %666 = vmatprep.subr.bf16.mxu0 %v838_v0  ;;  %726 = vmatprep.subr.bf16.mxu1 %v838_v0  ;;  %v751_v3 = vld [vmem:[#allocation5 + $0x28] sm:$0xff]   ;;  %v752_v4 = vld [vmem:[#allocation5 + $0x20] sm:$0xff]   ;;  %v753_v5 = vld [vmem:[#allocation5 + $0x18] sm:$0xff]  }
  0x1e   :  { %682 = vmatprep.mubr.msk.bf16.mxu0 %vm839_vm0, %v838_v0  ;;  %706 = vmatprep.mubr.msk.bf16.mxu1 %vm839_vm0, %v838_v0  ;;  %v754_v6 = vld [vmem:[#allocation5 + $0x10] sm:$0xff]   ;;  %v755_v7 = vld [vmem:[#allocation5 + $0x8] sm:$0xff]   ;;  %v756_v8 = vld [vmem:[#allocation5] sm:$0xff]  }
  0x1f   :  { %667 = vmatpush3.bf16.msra.mxu0 %v749_v1  ;;  %734 = vmatpush3.bf16.msra.mxu1 %v749_v1  ;;  %v757_v9 = vld [vmem:[#allocation2] sm:$0xff]   ;;  %v758_v10 = vld [vmem:[#allocation2 + $0x30] sm:$0xff]   ;;  %v759_v11 = vld [vmem:[#allocation2 + $0x8] sm:$0xff]  }
  0x20   :  { %668 = vmatprep.subr.bf16.mxu0 %v838_v0  ;;  %727 = vmatprep.subr.bf16.mxu1 %v838_v0  ;;  %v760_v12 = vld [vmem:[#allocation2 + $0x38] sm:$0xff]   ;;  %v761_v13 = vld [vmem:[#allocation2 + $0x10] sm:$0xff]   ;;  %v762_v14 = vld [vmem:[#allocation2 + $0x40] sm:$0xff]  }
  0x21   :  { %v763_v15 = vld [vmem:[#allocation2 + $0x18] sm:$0xff]   ;;  %v764_v16 = vld [vmem:[#allocation2 + $0x48] sm:$0xff]   ;;  %v765_v17 = vld [vmem:[#allocation2 + $0x20] sm:$0xff]  }
  0x22   :  { %v766_v18 = vld [vmem:[#allocation2 + $0x50] sm:$0xff]   ;;  %v767_v19 = vld [vmem:[#allocation2 + $0x28] sm:$0xff]   ;;  %v914_v20 = vld [vmem:[%s946_s2] ss:$0 sm:$0xff]  ;;  %s840_s2 = smov [#allocation7]  }
  0x23   :  { %669 = vmatpush3.bf16.msra.mxu0 %v750_v2  ;;  %735 = vmatpush3.bf16.msra.mxu1 %v750_v2  ;;  %s505_s24 = sshll.u32 %s840_s2, 4  ;;  %s506_s24 = int_to_ptr.vmem [resolvable:$true] %s505_s24 }
  0x24   :  { %670 = vmatprep.subr.bf16.mxu0 %v838_v0  ;;  %728 = vmatprep.subr.bf16.mxu1 %v838_v0  ;;  %s808_s25 = scalar_lea.vmem %s506_s24, 1408  ;;  %p813_p11 = scmp.lt.s32.totalorder %s506_s24, %s506_s24 }
  0x25   :  { %p809_p10 = scmp.ne.s32.totalorder %s506_s24, %s808_s25  ;;  %p814_p12 = scmp.lt.s32.totalorder %s808_s25, %s808_s25 }
  0x27   :  { %671 = vmatpush3.bf16.msra.mxu0 %v751_v3  ;;  %736 = vmatpush3.bf16.msra.mxu1 %v751_v3  ;;  %p815_p13 = por %p814_p12, %p813_p11 }
  0x28   :  { %672 = vmatprep.subr.bf16.mxu0 %v838_v0  ;;  %729 = vmatprep.subr.bf16.mxu1 %v838_v0 }
  0x29   :  { %p816_p0 = pnand %p815_p13, %p809_p10 }
  0x2b   :  { %673 = vmatpush3.bf16.msra.mxu0 %v752_v4  ;;  %737 = vmatpush3.bf16.msra.mxu1 %v752_v4 }
  0x2c   :  { %674 = vmatprep.subr.bf16.mxu0 %v838_v0  ;;  %730 = vmatprep.subr.bf16.mxu1 %v838_v0 }
  0x2f   :  { %675 = vmatpush3.bf16.msra.mxu0 %v753_v5  ;;  %738 = vmatpush3.bf16.msra.mxu1 %v753_v5 }
  0x30   :  { %676 = vmatprep.subr.bf16.mxu0 %v838_v0  ;;  %731 = vmatprep.subr.bf16.mxu1 %v838_v0 }
  0x33   :  { %677 = vmatpush3.bf16.msra.mxu0 %v754_v6  ;;  %739 = vmatpush3.bf16.msra.mxu1 %v754_v6 }
  0x34   :  { %678 = vmatprep.subr.bf16.mxu0 %v838_v0  ;;  %732 = vmatprep.subr.bf16.mxu1 %v838_v0 }
  0x37   :  { %679 = vmatpush3.bf16.msra.mxu0 %v755_v7  ;;  %740 = vmatpush3.bf16.msra.mxu1 %v755_v7 }
  0x38   :  { %680 = vmatprep.subr.bf16.mxu0 %v838_v0  ;;  %733 = vmatprep.subr.bf16.mxu1 %v838_v0 }
  0x3b   :  { %681 = vmatpush3.bf16.msra.mxu0 %v756_v8  ;;  %741 = vmatpush3.bf16.msra.mxu1 %v756_v8 }
  0x3e   :  { %683 = vmatmul.mubr.bf16.vlgmr.msra.gmra.mxu0 %v757_v9  ;;  %707 = vmatmul.mubr.bf16.vlgmr.msra.gmra.mxu1 %v758_v10 }
  0x3f   :  { %686 = vmatprep.mubr.msk.bf16.mxu0 %vm839_vm0, %v838_v0  ;;  %710 = vmatprep.mubr.msk.bf16.mxu1 %vm839_vm0, %v838_v0 }
  0x46   :  { %687 = vmatmul.mubr.bf16.gmra.mxu0 %v759_v11  ;;  %711 = vmatmul.mubr.bf16.gmra.mxu1 %v760_v12 }
  0x47   :  { %690 = vmatprep.mubr.msk.bf16.mxu0 %vm839_vm0, %v838_v0  ;;  %714 = vmatprep.mubr.msk.bf16.mxu1 %vm839_vm0, %v838_v0 }
  0x4e   :  { %691 = vmatmul.mubr.bf16.gmra.mxu0 %v761_v13  ;;  %715 = vmatmul.mubr.bf16.gmra.mxu1 %v762_v14 }
  0x4f   :  { %694 = vmatprep.mubr.msk.bf16.mxu0 %vm839_vm0, %v838_v0  ;;  %718 = vmatprep.mubr.msk.bf16.mxu1 %vm839_vm0, %v838_v0 }
  0x56   :  { %695 = vmatmul.mubr.bf16.gmra.mxu0 %v763_v15  ;;  %719 = vmatmul.mubr.bf16.gmra.mxu1 %v764_v16 }
  0x57   :  { %698 = vmatprep.mubr.msk.bf16.mxu0 %vm839_vm0, %v838_v0  ;;  %722 = vmatprep.mubr.msk.bf16.mxu1 %vm839_vm0, %v838_v0 }
  0x5e   :  { %699 = vmatmul.mubr.bf16.gmra.mxu0 %v765_v17  ;;  %723 = vmatmul.mubr.bf16.gmra.mxu1 %v766_v18 }
  0x5f   :  { %702 = vmatprep.mubr.msk.bf16.mxu0 %vm839_vm0, %v838_v0 }
  0x66   :  { %703 = vmatmul.mubr.bf16.gmra.mxu0 %v767_v19 }
  0xfe   :  { %v237_v21 = vpop.f32.mrf.mxu0  ;;  %v285_v22 = vpop.f32.mrf.mxu1 }
  0xff   :  { %v238_v23 = vadd.f32 %v914_v20, %v237_v21  ;;  %v286_v24 = vadd.f32 %v914_v20, %v285_v22 }
 0x100   :  { %v684_v25 = vpop.f32.mrf.mxu0  ;;  %v708_v26 = vpop.f32.mrf.mxu1 }
 0x101   :  { %vm336_vm1 = vcmp.gt.f32.partialorder %v286_v24, 0.0  ;;  %v358_v27 = vmul.f32 0.2, %v286_v24  ;;  %v346_v28 = vmul.f32 0.2, %v238_v23  ;;  %vm324_vm2 = vcmp.gt.f32.partialorder %v238_v23, 0.0 }
 0x102   :  { %v240_v29 = vpop.f32.mrf.mxu0  ;;  %v288_v30 = vpop.f32.mrf.mxu1 }
 0x103   :  { %v241_v31 = vadd.f32 %v914_v20, %v240_v29  ;;  %v289_v32 = vadd.f32 %v914_v20, %v288_v30  ;;  %v380_v33 = vsel %vm336_vm1, %v286_v24, %v358_v27  ;;  %v368_v38 = vsel %vm324_vm2, %v238_v23, %v346_v28 }
 0x104   :  { %v685_v34 = vpop.f32.mrf.mxu0  ;;  %v709_v35 = vpop.f32.mrf.mxu1 }
 0x105   :  { %vm325_vm3 = vcmp.gt.f32.partialorder %v241_v31, 0.0  ;;  %v347_v36 = vmul.f32 0.2, %v241_v31  ;;  %vm337_vm4 = vcmp.gt.f32.partialorder %v289_v32, 0.0  ;;  %v359_v37 = vmul.f32 0.2, %v289_v32 }
 0x106   :  { %v245_v39 = vpop.f32.mrf.mxu0  ;;  %v293_v40 = vpop.f32.mrf.mxu1 }
 0x107   :  { %v369_v41 = vsel %vm325_vm3, %v241_v31, %v347_v36  ;;  %v381_v42 = vsel %vm337_vm4, %v289_v32, %v359_v37  ;;  %v246_v43 = vadd.f32 %v914_v20, %v245_v39  ;;  %v294_v44 = vadd.f32 %v914_v20, %v293_v40 }
 0x108   :  { %v585_v45 = vpack.c.bf16 %v369_v41, %v368_v38  ;;  %v615_v46 = vpack.c.bf16 %v381_v42, %v380_v33  ;;  %v688_v47 = vpop.f32.mrf.mxu0  ;;  %v712_v48 = vpop.f32.mrf.mxu1 }
 0x109   :  { %vm338_vm5 = vcmp.gt.f32.partialorder %v294_v44, 0.0  ;;  %v360_v49 = vmul.f32 0.2, %v294_v44  ;;  %v348_v50 = vmul.f32 0.2, %v246_v43  ;;  %vm326_vm6 = vcmp.gt.f32.partialorder %v246_v43, 0.0 }
 0x10a   :  { %586 = vst [vmem:[#allocation7] sm:$0xff] %v585_v45   ;;  %642 = vst [vmem:[#allocation7 + $0x30] sm:$0xff] %v615_v46   ;;  %v248_v51 = vpop.f32.mrf.mxu0  ;;  %v296_v52 = vpop.f32.mrf.mxu1 }
 0x10b   :  { %v249_v53 = vadd.f32 %v914_v20, %v248_v51  ;;  %v297_v54 = vadd.f32 %v914_v20, %v296_v52  ;;  %v382_v55 = vsel %vm338_vm5, %v294_v44, %v360_v49  ;;  %v370_v60 = vsel %vm326_vm6, %v246_v43, %v348_v50 }
 0x10c   :  { %v689_v56 = vpop.f32.mrf.mxu0  ;;  %v713_v57 = vpop.f32.mrf.mxu1 }
 0x10d   :  { %vm327_vm7 = vcmp.gt.f32.partialorder %v249_v53, 0.0  ;;  %v349_v58 = vmul.f32 0.2, %v249_v53  ;;  %vm339_vm8 = vcmp.gt.f32.partialorder %v297_v54, 0.0  ;;  %v361_v59 = vmul.f32 0.2, %v297_v54 }
 0x10e   :  { %v253_v61 = vpop.f32.mrf.mxu0  ;;  %v301_v62 = vpop.f32.mrf.mxu1 }
 0x10f   :  { %v371_v63 = vsel %vm327_vm7, %v249_v53, %v349_v58  ;;  %v383_v0 = vsel %vm339_vm8, %v297_v54, %v361_v59  ;;  %v254_v1 = vadd.f32 %v914_v20, %v253_v61  ;;  %v302_v2 = vadd.f32 %v914_v20, %v301_v62 }
 0x110   :  { %v590_v3 = vpack.c.bf16 %v371_v63, %v370_v60  ;;  %v620_v4 = vpack.c.bf16 %v383_v0, %v382_v55  ;;  %v692_v5 = vpop.f32.mrf.mxu0  ;;  %v716_v6 = vpop.f32.mrf.mxu1 }
 0x111   :  { %vm340_vm9 = vcmp.gt.f32.partialorder %v302_v2, 0.0  ;;  %v362_v7 = vmul.f32 0.2, %v302_v2  ;;  %v350_v8 = vmul.f32 0.2, %v254_v1  ;;  %vm328_vm10 = vcmp.gt.f32.partialorder %v254_v1, 0.0 }
 0x112   :  { %637 = vst [vmem:[#allocation7 + $0x8] sm:$0xff] %v590_v3   ;;  %643 = vst [vmem:[#allocation7 + $0x38] sm:$0xff] %v620_v4   ;;  %v256_v9 = vpop.f32.mrf.mxu0  ;;  %v304_v10 = vpop.f32.mrf.mxu1 }
 0x113   :  { %v257_v11 = vadd.f32 %v914_v20, %v256_v9  ;;  %v305_v12 = vadd.f32 %v914_v20, %v304_v10  ;;  %v384_v13 = vsel %vm340_vm9, %v302_v2, %v362_v7  ;;  %v372_v18 = vsel %vm328_vm10, %v254_v1, %v350_v8 }
 0x114   :  { %v693_v14 = vpop.f32.mrf.mxu0  ;;  %v717_v15 = vpop.f32.mrf.mxu1 }
 0x115   :  { %vm329_vm11 = vcmp.gt.f32.partialorder %v257_v11, 0.0  ;;  %v351_v16 = vmul.f32 0.2, %v257_v11  ;;  %vm341_vm12 = vcmp.gt.f32.partialorder %v305_v12, 0.0  ;;  %v363_v17 = vmul.f32 0.2, %v305_v12 }
 0x116   :  { %v261_v19 = vpop.f32.mrf.mxu0  ;;  %v309_v21 = vpop.f32.mrf.mxu1 }
 0x117   :  { %v373_v22 = vsel %vm329_vm11, %v257_v11, %v351_v16  ;;  %v385_v23 = vsel %vm341_vm12, %v305_v12, %v363_v17  ;;  %v262_v24 = vadd.f32 %v914_v20, %v261_v19  ;;  %v310_v25 = vadd.f32 %v914_v20, %v309_v21 }
 0x118   :  { %v595_v26 = vpack.c.bf16 %v373_v22, %v372_v18  ;;  %v625_v27 = vpack.c.bf16 %v385_v23, %v384_v13  ;;  %v696_v28 = vpop.f32.mrf.mxu0  ;;  %v720_v29 = vpop.f32.mrf.mxu1 }
 0x119   :  { %vm342_vm13 = vcmp.gt.f32.partialorder %v310_v25, 0.0  ;;  %v364_v30 = vmul.f32 0.2, %v310_v25  ;;  %v352_v31 = vmul.f32 0.2, %v262_v24  ;;  %vm330_vm14 = vcmp.gt.f32.partialorder %v262_v24, 0.0 }
 0x11a   :  { %638 = vst [vmem:[#allocation7 + $0x10] sm:$0xff] %v595_v26   ;;  %644 = vst [vmem:[#allocation7 + $0x40] sm:$0xff] %v625_v27   ;;  %v264_v32 = vpop.f32.mrf.mxu0  ;;  %v312_v33 = vpop.f32.mrf.mxu1 }
 0x11b   :  { %v265_v34 = vadd.f32 %v914_v20, %v264_v32  ;;  %v313_v35 = vadd.f32 %v914_v20, %v312_v33  ;;  %v386_v36 = vsel %vm342_vm13, %v310_v25, %v364_v30  ;;  %v374_v41 = vsel %vm330_vm14, %v262_v24, %v352_v31 }
 0x11c   :  { %v697_v37 = vpop.f32.mrf.mxu0  ;;  %v721_v38 = vpop.f32.mrf.mxu1 }
 0x11d   :  { %vm331_vm15 = vcmp.gt.f32.partialorder %v265_v34, 0.0  ;;  %v353_v39 = vmul.f32 0.2, %v265_v34  ;;  %vm343_vm0 = vcmp.gt.f32.partialorder %v313_v35, 0.0  ;;  %v365_v40 = vmul.f32 0.2, %v313_v35 }
 0x11e   :  { %v269_v42 = vpop.f32.mrf.mxu0  ;;  %v317_v43 = vpop.f32.mrf.mxu1 }
 0x11f   :  { %v375_v44 = vsel %vm331_vm15, %v265_v34, %v353_v39  ;;  %v387_v45 = vsel %vm343_vm0, %v313_v35, %v365_v40  ;;  %v270_v46 = vadd.f32 %v914_v20, %v269_v42  ;;  %v318_v47 = vadd.f32 %v914_v20, %v317_v43 }
 0x120   :  { %v600_v48 = vpack.c.bf16 %v375_v44, %v374_v41  ;;  %v630_v49 = vpack.c.bf16 %v387_v45, %v386_v36  ;;  %v700_v50 = vpop.f32.mrf.mxu0  ;;  %v724_v51 = vpop.f32.mrf.mxu1 }
 0x121   :  { %vm344_vm1 = vcmp.gt.f32.partialorder %v318_v47, 0.0  ;;  %v366_v52 = vmul.f32 0.2, %v318_v47  ;;  %v354_v55 = vmul.f32 0.2, %v270_v46  ;;  %vm332_vm2 = vcmp.gt.f32.partialorder %v270_v46, 0.0 }
 0x122   :  { %639 = vst [vmem:[#allocation7 + $0x18] sm:$0xff] %v600_v48   ;;  %645 = vst [vmem:[#allocation7 + $0x48] sm:$0xff] %v630_v49   ;;  %v272_v53 = vpop.f32.mrf.mxu0  ;;  %v320_v54 = vpop.f32.mrf.mxu1 }
 0x123   :  { %v273_v56 = vadd.f32 %v914_v20, %v272_v53  ;;  %v321_v57 = vadd.f32 %v914_v20, %v320_v54  ;;  %v388_v58 = vsel %vm344_vm1, %v318_v47, %v366_v52  ;;  %v376_v0 = vsel %vm332_vm2, %v270_v46, %v354_v55 }
 0x124   :  { %v701_v59 = vpop.f32.mrf.mxu0  ;;  %v725_v60 = vpop.f32.mrf.mxu1 }
 0x125   :  { %vm333_vm3 = vcmp.gt.f32.partialorder %v273_v56, 0.0  ;;  %v355_v61 = vmul.f32 0.2, %v273_v56  ;;  %vm345_vm4 = vcmp.gt.f32.partialorder %v321_v57, 0.0  ;;  %v367_v62 = vmul.f32 0.2, %v321_v57 }
 0x126   :  { %v277_v63 = vpop.f32.mrf.mxu0 }
 0x127   :  { %v377_v1 = vsel %vm333_vm3, %v273_v56, %v355_v61  ;;  %v389_v2 = vsel %vm345_vm4, %v321_v57, %v367_v62  ;;  %v278_v3 = vadd.f32 %v914_v20, %v277_v63 }
 0x128   :  { %v605_v4 = vpack.c.bf16 %v377_v1, %v376_v0  ;;  %v635_v5 = vpack.c.bf16 %v389_v2, %v388_v58  ;;  %v704_v6 = vpop.f32.mrf.mxu0 }
 0x129   :  { %v356_v8 = vmul.f32 0.2, %v278_v3  ;;  %vm334_vm5 = vcmp.gt.f32.partialorder %v278_v3, 0.0 }
 0x12a   :  { %640 = vst [vmem:[#allocation7 + $0x20] sm:$0xff] %v605_v4   ;;  %646 = vst [vmem:[#allocation7 + $0x50] sm:$0xff] %v635_v5   ;;  %v280_v7 = vpop.f32.mrf.mxu0 }
 0x12b   :  { %v281_v9 = vadd.f32 %v914_v20, %v280_v7  ;;  %v378_v12 = vsel %vm334_vm5, %v278_v3, %v356_v8 }
 0x12c   :  { %v705_v10 = vpop.f32.mrf.mxu0 }
 0x12d   :  { %vm335_vm6 = vcmp.gt.f32.partialorder %v281_v9, 0.0  ;;  %v357_v11 = vmul.f32 0.2, %v281_v9 }
 0x12f   :  { %v379_v13 = vsel %vm335_vm6, %v281_v9, %v357_v11 }
 0x130   :  { %v610_v14 = vpack.c.bf16 %v379_v13, %v378_v12 }
 0x132   :  { %641 = vst [vmem:[#allocation7 + $0x28] sm:$0xff] %v610_v14  }
 0x133   :  { %819 = shalt.err (!%p816_p0)
}
 0x134   :  { %511 = dma.vmem_to_hbm [thread:$0]  %s506_s24, 1408, %s947_s3, [#allocation4], %s835_s15, %s835_s15, %s836_s16  }
 0x135   :  { %832 = dma.done.wait [#allocation4], 1408  }
 0x136   :  { %833 = vsyncadd [#allocation4], 4294965888 }
 0x137   :  { %515 = vsyncpa [#allocation3], 1 }
 0x138   :  { %516 = vsyncpa [#allocation6], 1 }
 0x139   :  { %517 = vsyncpa [#allocation4], 1 }

</bundles_post_ra>
